<compile_context>
chip_gen: v6e
topology: v6e:2x2x1
jax: 0.10.0
libtpu: 0.0.40
codegen_flags: <defaults>
</compile_context>

<pallas_src>
import functools

import jax
import jax.numpy as jnp
from jax.experimental import pallas as pl
from jax.experimental.pallas import tpu as pltpu

EPS = 1e-5


# ----------------------------------------------------------------------------
# Fused MixtureNorm kernel.
# ----------------------------------------------------------------------------
def _mixture_norm_kernel(x_ref, g_ref, b_ref, o_ref, sum_ref, sq_ref,
                         *, n_batch_ch, inv_nhw, inv_hw):
    # x_ref  : (N, C, tile_hw)  current spatial tile, lane axis = H*W chunk
    # g_ref  : (1, C)           affine gamma (identity on the InstanceNorm half)
    # b_ref  : (1, C)           affine beta  (zero on the InstanceNorm half)
    # o_ref  : (N, C, tile_hw)
    # sum_ref, sq_ref : (N, C)  VMEM accumulators, persist across grid steps
    p = pl.program_id(0)   # 0 = statistics pass, 1 = normalization pass
    t = pl.program_id(1)   # spatial tile index

    @pl.when(p == 0)
    def _stats_pass():
        @pl.when(t == 0)
        def _init():
            sum_ref[...] = jnp.zeros_like(sum_ref)
            sq_ref[...] = jnp.zeros_like(sq_ref)

        x = x_ref[...]                               # (N, C, tile_hw)
        sum_ref[...] += jnp.sum(x, axis=2)           # (N, C)
        sq_ref[...] += jnp.sum(x * x, axis=2)        # (N, C)

    @pl.when(p == 1)
    def _normalize_pass():
        s = sum_ref[...]                             # (N, C)
        q = sq_ref[...]
        n, c = s.shape

        # BatchNorm statistics: also reduce over the batch dimension.
        bn_mean = jnp.sum(s, axis=0, keepdims=True) * inv_nhw           # (1, C)
        bn_var = jnp.sum(q, axis=0, keepdims=True) * inv_nhw - bn_mean * bn_mean

        # InstanceNorm statistics: per (n, c).
        in_mean = s * inv_hw                                            # (N, C)
        in_var = q * inv_hw - in_mean * in_mean

        c_idx = jax.lax.broadcasted_iota(jnp.int32, (n, c), 1)
        is_bn = c_idx < n_batch_ch
        mean = jnp.where(is_bn, jnp.broadcast_to(bn_mean, (n, c)), in_mean)
        var = jnp.where(is_bn, jnp.broadcast_to(bn_var, (n, c)), in_var)
        var = jnp.maximum(var, 0.0)    # guard E[x^2]-mean^2 cancellation

        scale = g_ref[...] * jax.lax.rsqrt(var + EPS)                   # (N, C)
        shift = b_ref[...] - mean * scale                               # (N, C)

        o_ref[...] = x_ref[...] * scale[:, :, None] + shift[:, :, None]


def _pick_tile_hw(hw, n, c, max_block_bytes=4 << 20):
    """Largest multiple-of-128 divisor of hw whose (n, c, tile) f32 block fits."""
    if hw % 128 != 0:
        return hw                      # full extent is always a legal block dim
    best = 128
    for d in range(128, hw + 1, 128):
        if hw % d == 0 and n * c * d * 4 <= max_block_bytes:
            best = d
    return best


def mixture_norm(x_nchw, gamma, beta):
    """MixtureNorm forward. x_nchw: (N, C, H, W); gamma/beta: (C // 2,)."""
    N, C, H, W = x_nchw.shape
    Cb = C // 2
    Ci = C - Cb
    HW = H * W

    # Lane-dense spatial axis; keeps NCHW order so no boundary transposes.
    x3 = x_nchw.reshape(N, C, HW).astype(jnp.float32)

    # Full-width per-channel affine: identity on the InstanceNorm half.
    g_full = jnp.concatenate(
        [gamma.reshape(-1).astype(jnp.float32), jnp.ones((Ci,), jnp.float32)]
    ).reshape(1, C)
    b_full = jnp.concatenate(
        [beta.reshape(-1).astype(jnp.float32), jnp.zeros((Ci,), jnp.float32)]
    ).reshape(1, C)

    tile_hw = _pick_tile_hw(HW, N, C)
    num_tiles = HW // tile_hw

    kernel = functools.partial(
        _mixture_norm_kernel,
        n_batch_ch=Cb,
        inv_nhw=1.0 / float(N * HW),
        inv_hw=1.0 / float(HW),
    )

    out = pl.pallas_call(
        kernel,
        out_shape=jax.ShapeDtypeStruct((N, C, HW), jnp.float32),
        grid=(2, num_tiles),
        in_specs=[
            pl.BlockSpec((N, C, tile_hw), lambda p, t: (0, 0, t)),
            pl.BlockSpec((1, C), lambda p, t: (0, 0)),
            pl.BlockSpec((1, C), lambda p, t: (0, 0)),
        ],
        # The output block only advances during the normalize pass (p == 1);
        # during the stats pass block 0 stays resident so nothing is written.
        out_specs=pl.BlockSpec((N, C, tile_hw), lambda p, t: (0, 0, t * p)),
        scratch_shapes=[
            pltpu.VMEM((N, C), jnp.float32),   # per-(n, c) sum
            pltpu.VMEM((N, C), jnp.float32),   # per-(n, c) sum of squares
        ],
        compiler_params=pltpu.CompilerParams(
            dimension_semantics=("arbitrary", "arbitrary")),
    )(x3, g_full, b_full)

    return out.reshape(N, C, H, W)


# ----------------------------------------------------------------------------
# Pure-JAX reference for correctness checking.
# ----------------------------------------------------------------------------
def _ref_mixture_norm(x, gamma, beta):
    N, C, H, W = x.shape
    Cb = C // 2
    xb = x[:, :Cb].astype(jnp.float32)
    xi = x[:, Cb:].astype(jnp.float32)

    mean_b = jnp.mean(xb, axis=(0, 2, 3), keepdims=True)
    var_b = jnp.mean(jnp.square(xb - mean_b), axis=(0, 2, 3), keepdims=True)
    yb = (xb - mean_b) * jax.lax.rsqrt(var_b + EPS)
    yb = yb * gamma.reshape(1, Cb, 1, 1) + beta.reshape(1, Cb, 1, 1)

    mean_i = jnp.mean(xi, axis=(2, 3), keepdims=True)
    var_i = jnp.mean(jnp.square(xi - mean_i), axis=(2, 3), keepdims=True)
    yi = (xi - mean_i) * jax.lax.rsqrt(var_i + EPS)

    return jnp.concatenate([yb, yi], axis=1)


if __name__ == "__main__":
    N, C, H, W = 2, 4, 16, 16
    Cb = C // 2

    key = jax.random.PRNGKey(0)
    kx, kg, kb = jax.random.split(key, 3)

    x = jax.random.normal(kx, (N, C, H, W), dtype=jnp.float32)
    # Affine params of the BatchNorm half (fresh torch module would be 1/0;
    # use nontrivial values to exercise the affine path).
    gamma = 1.0 + 0.1 * jax.random.normal(kg, (Cb,), dtype=jnp.float32)
    beta = 0.1 * jax.random.normal(kb, (Cb,), dtype=jnp.float32)

    out = jax.block_until_ready(mixture_norm(x, gamma, beta))
    ref = jax.block_until_ready(_ref_mixture_norm(x, gamma, beta))

    assert out.shape == (N, C, H, W), out.shape
    assert jnp.allclose(out, ref, atol=1e-4, rtol=1e-4), \
        float(jnp.max(jnp.abs(out - ref)))

    print("KERNEL_OK")
</pallas_src>

<mosaic_0001>
module attributes {stable_mosaic.version = 11 : i64} {
  func.func @_mixture_norm_kernel(%arg0: i32, %arg1: i32, %arg2: memref<2x4x256xf32, #tpu.memory_space<vmem>>, %arg3: memref<1x4xf32, #tpu.memory_space<vmem>>, %arg4: memref<1x4xf32, #tpu.memory_space<vmem>>, %arg5: memref<2x4x256xf32, #tpu.memory_space<vmem>>, %arg6: memref<2x4xf32, #tpu.memory_space<vmem>>, %arg7: memref<2x4xf32, #tpu.memory_space<vmem>>) attributes {dimension_semantics = [#tpu.dimension_semantics<arbitrary>, #tpu.dimension_semantics<arbitrary>], iteration_bounds = array<i64: 2, 1>, scalar_prefetch = 0 : i64, scratch_operands = 2 : i64, tpu.core_type = #tpu.core_type<tc>, window_params = [{transform_indices = @transform_0, window_bounds = array<i64: 2, 4, 256>}, {pipeline_mode = #tpu.pipeline_mode<synchronous>, transform_indices = @transform_1, window_bounds = array<i64: 1, 4>}, {pipeline_mode = #tpu.pipeline_mode<synchronous>, transform_indices = @transform_2, window_bounds = array<i64: 1, 4>}, {transform_indices = @transform_3, window_bounds = array<i64: 2, 4, 256>}]} {
    %c0_i32 = arith.constant 0 : i32
    %0 = arith.cmpi eq, %arg0, %c0_i32 : i32
    %1 = arith.extui %0 : i1 to i32
    %c0_i32_0 = arith.constant 0 : i32
    %2 = arith.cmpi ne, %1, %c0_i32_0 : i32
    scf.if %2 {
      %c0_i32_2 = arith.constant 0 : i32
      %6 = arith.cmpi eq, %arg1, %c0_i32_2 : i32
      %7 = arith.extui %6 : i1 to i32
      %c0_i32_3 = arith.constant 0 : i32
      %8 = arith.cmpi ne, %7, %c0_i32_3 : i32
      scf.if %8 {
        %cst_15 = arith.constant 0.000000e+00 : f32
        %19 = vector.broadcast %cst_15 : f32 to vector<2x4xf32>
        %c0_16 = arith.constant 0 : index
        %c0_17 = arith.constant 0 : index
        %20 = vector.load %arg6[%c0_16, %c0_17] : memref<2x4xf32, #tpu.memory_space<vmem>>, vector<2x4xf32>
        tpu.vector_store %arg6[%c0_16, %c0_17], %19 {strides = array<i32>} : memref<2x4xf32, #tpu.memory_space<vmem>>, vector<2x4xf32>,
        %cst_18 = arith.constant 0.000000e+00 : f32
        %21 = vector.broadcast %cst_18 : f32 to vector<2x4xf32>
        %c0_19 = arith.constant 0 : index
        %c0_20 = arith.constant 0 : index
        %22 = vector.load %arg7[%c0_19, %c0_20] : memref<2x4xf32, #tpu.memory_space<vmem>>, vector<2x4xf32>
        tpu.vector_store %arg7[%c0_19, %c0_20], %21 {strides = array<i32>} : memref<2x4xf32, #tpu.memory_space<vmem>>, vector<2x4xf32>,
      } else {
      }
      %c0 = arith.constant 0 : index
      %c0_4 = arith.constant 0 : index
      %c0_5 = arith.constant 0 : index
      %9 = vector.load %arg2[%c0, %c0_4, %c0_5] : memref<2x4x256xf32, #tpu.memory_space<vmem>>, vector<2x4x256xf32>
      %c0_6 = arith.constant 0 : index
      %c0_7 = arith.constant 0 : index
      %10 = vector.load %arg6[%c0_6, %c0_7] : memref<2x4xf32, #tpu.memory_space<vmem>>, vector<2x4xf32>
      %cst = arith.constant dense<0.000000e+00> : vector<2x4xf32>
      %11 = vector.multi_reduction <add>, %9, %cst [2] : vector<2x4x256xf32> to vector<2x4xf32>
      %12 = arith.addf %10, %11 : vector<2x4xf32>
      %c0_8 = arith.constant 0 : index
      %c0_9 = arith.constant 0 : index
      %13 = vector.load %arg6[%c0_8, %c0_9] : memref<2x4xf32, #tpu.memory_space<vmem>>, vector<2x4xf32>
      tpu.vector_store %arg6[%c0_8, %c0_9], %12 {strides = array<i32>} : memref<2x4xf32, #tpu.memory_space<vmem>>, vector<2x4xf32>,
      %c0_10 = arith.constant 0 : index
      %c0_11 = arith.constant 0 : index
      %14 = vector.load %arg7[%c0_10, %c0_11] : memref<2x4xf32, #tpu.memory_space<vmem>>, vector<2x4xf32>
      %15 = arith.mulf %9, %9 : vector<2x4x256xf32>
      %cst_12 = arith.constant dense<0.000000e+00> : vector<2x4xf32>
      %16 = vector.multi_reduction <add>, %15, %cst_12 [2] : vector<2x4x256xf32> to vector<2x4xf32>
      %17 = arith.addf %14, %16 : vector<2x4xf32>
      %c0_13 = arith.constant 0 : index
      %c0_14 = arith.constant 0 : index
      %18 = vector.load %arg7[%c0_13, %c0_14] : memref<2x4xf32, #tpu.memory_space<vmem>>, vector<2x4xf32>
      tpu.vector_store %arg7[%c0_13, %c0_14], %17 {strides = array<i32>} : memref<2x4xf32, #tpu.memory_space<vmem>>, vector<2x4xf32>,
    } else {
    }
    %c1_i32 = arith.constant 1 : i32
    %3 = arith.cmpi eq, %arg0, %c1_i32 : i32
    %4 = arith.extui %3 : i1 to i32
    %c0_i32_1 = arith.constant 0 : i32
    %5 = arith.cmpi ne, %4, %c0_i32_1 : i32
    scf.if %5 {
      %c0 = arith.constant 0 : index
      %c0_2 = arith.constant 0 : index
      %6 = vector.load %arg6[%c0, %c0_2] : memref<2x4xf32, #tpu.memory_space<vmem>>, vector<2x4xf32>
      %c0_3 = arith.constant 0 : index
      %c0_4 = arith.constant 0 : index
      %7 = vector.load %arg7[%c0_3, %c0_4] : memref<2x4xf32, #tpu.memory_space<vmem>>, vector<2x4xf32>
      %cst = arith.constant dense<0.000000e+00> : vector<4xf32>
      %8 = vector.multi_reduction <add>, %6, %cst [0] : vector<2x4xf32> to vector<4xf32>
      %9 = vector.shape_cast %8 : vector<4xf32> to vector<1x4xf32>
      %cst_5 = arith.constant 0.001953125 : f32
      %10 = vector.broadcast %cst_5 : f32 to vector<1x4xf32>
      %11 = arith.mulf %9, %10 : vector<1x4xf32>
      %cst_6 = arith.constant dense<0.000000e+00> : vector<4xf32>
      %12 = vector.multi_reduction <add>, %7, %cst_6 [0] : vector<2x4xf32> to vector<4xf32>
      %13 = vector.shape_cast %12 : vector<4xf32> to vector<1x4xf32>
      %cst_7 = arith.constant 0.001953125 : f32
      %14 = vector.broadcast %cst_7 : f32 to vector<1x4xf32>
      %15 = arith.mulf %13, %14 : vector<1x4xf32>
      %16 = arith.mulf %11, %11 : vector<1x4xf32>
      %17 = arith.subf %15, %16 : vector<1x4xf32>
      %cst_8 = arith.constant 3.906250e-03 : f32
      %18 = vector.broadcast %cst_8 : f32 to vector<2x4xf32>
      %19 = arith.mulf %6, %18 : vector<2x4xf32>
      %cst_9 = arith.constant 3.906250e-03 : f32
      %20 = vector.broadcast %cst_9 : f32 to vector<2x4xf32>
      %21 = arith.mulf %7, %20 : vector<2x4xf32>
      %22 = arith.mulf %19, %19 : vector<2x4xf32>
      %23 = arith.subf %21, %22 : vector<2x4xf32>
      %24 = tpu.iota {dimensions = array<i32: 1>} : vector<2x4xi32>
      %c2_i32 = arith.constant 2 : i32
      %25 = vector.broadcast %c2_i32 : i32 to vector<2x4xi32>
      %26 = arith.cmpi slt, %24, %25 : vector<2x4xi32>
      %27 = vector.shape_cast %11 : vector<1x4xf32> to vector<1x4xf32>
      %28 = vector.broadcast %27 : vector<1x4xf32> to vector<2x4xf32>
      %29 = arith.select %26, %28, %19 : vector<2x4xi1>, vector<2x4xf32>
      %30 = vector.shape_cast %17 : vector<1x4xf32> to vector<1x4xf32>
      %31 = vector.broadcast %30 : vector<1x4xf32> to vector<2x4xf32>
      %32 = arith.select %26, %31, %23 : vector<2x4xi1>, vector<2x4xf32>
      %cst_10 = arith.constant 0.000000e+00 : f32
      %33 = vector.broadcast %cst_10 : f32 to vector<2x4xf32>
      %34 = arith.maximumf %32, %33 : vector<2x4xf32>
      %c0_11 = arith.constant 0 : index
      %c0_12 = arith.constant 0 : index
      %35 = vector.load %arg3[%c0_11, %c0_12] : memref<1x4xf32, #tpu.memory_space<vmem>>, vector<1x4xf32>
      %cst_13 = arith.constant 9.99999974E-6 : f32
      %36 = vector.broadcast %cst_13 : f32 to vector<2x4xf32>
      %37 = arith.addf %34, %36 : vector<2x4xf32>
      %38 = math.rsqrt %37 : vector<2x4xf32>
      %39 = vector.broadcast %35 : vector<1x4xf32> to vector<2x4xf32>
      %40 = arith.mulf %39, %38 : vector<2x4xf32>
      %c0_14 = arith.constant 0 : index
      %c0_15 = arith.constant 0 : index
      %41 = vector.load %arg4[%c0_14, %c0_15] : memref<1x4xf32, #tpu.memory_space<vmem>>, vector<1x4xf32>
      %42 = arith.mulf %29, %40 : vector<2x4xf32>
      %43 = vector.broadcast %41 : vector<1x4xf32> to vector<2x4xf32>
      %44 = arith.subf %43, %42 : vector<2x4xf32>
      %c0_16 = arith.constant 0 : index
      %c0_17 = arith.constant 0 : index
      %c0_18 = arith.constant 0 : index
      %45 = vector.load %arg2[%c0_16, %c0_17, %c0_18] : memref<2x4x256xf32, #tpu.memory_space<vmem>>, vector<2x4x256xf32>
      %46 = vector.shape_cast %40 : vector<2x4xf32> to vector<2x4x1xf32>
      %47 = vector.broadcast %46 : vector<2x4x1xf32> to vector<2x4x256xf32>
      %48 = arith.mulf %45, %47 : vector<2x4x256xf32>
      %49 = vector.shape_cast %44 : vector<2x4xf32> to vector<2x4x1xf32>
      %50 = vector.broadcast %49 : vector<2x4x1xf32> to vector<2x4x256xf32>
      %51 = arith.addf %48, %50 : vector<2x4x256xf32>
      %c0_19 = arith.constant 0 : index
      %c0_20 = arith.constant 0 : index
      %c0_21 = arith.constant 0 : index
      %52 = vector.load %arg5[%c0_19, %c0_20, %c0_21] : memref<2x4x256xf32, #tpu.memory_space<vmem>>, vector<2x4x256xf32>
      tpu.vector_store %arg5[%c0_19, %c0_20, %c0_21], %51 {strides = array<i32>} : memref<2x4x256xf32, #tpu.memory_space<vmem>>, vector<2x4x256xf32>,
    } else {
    }
    return
  }
  func.func @transform_0(%arg0: i32, %arg1: i32) -> (i32, i32, i32) {
    %c0_i32 = arith.constant 0 : i32
    %c0_i32_0 = arith.constant 0 : i32
    %c0_i32_1 = arith.constant 0 : i32
    return %c0_i32, %c0_i32_0, %arg1 : i32, i32, i32
  }
  func.func @transform_1(%arg0: i32, %arg1: i32) -> (i32, i32) {
    %c0_i32 = arith.constant 0 : i32
    %c0_i32_0 = arith.constant 0 : i32
    %c0_i32_1 = arith.constant 0 : i32
    return %c0_i32, %c0_i32_0 : i32, i32
  }
  func.func @transform_2(%arg0: i32, %arg1: i32) -> (i32, i32) {
    %c0_i32 = arith.constant 0 : i32
    %c0_i32_0 = arith.constant 0 : i32
    %c0_i32_1 = arith.constant 0 : i32
    return %c0_i32, %c0_i32_0 : i32, i32
  }
  func.func @transform_3(%arg0: i32, %arg1: i32) -> (i32, i32, i32) {
    %0 = arith.muli %arg1, %arg0 : i32
    %c0_i32 = arith.constant 0 : i32
    %c0_i32_0 = arith.constant 0 : i32
    %c0_i32_1 = arith.constant 0 : i32
    return %c0_i32, %c0_i32_0, %0 : i32, i32, i32
  }
}

</mosaic_0001>

<bundles_post_ra>
// kernel: tpu_custom_call.1
= control target key start
LH: loop header
LB: loop body
LE: loop exit
PB: predicated region body
PF: predicated region fallthrough
CT: control target
= control target key end

     0   :  { %8 = vsyncpa [#allocation5], 0  ;;  %s755_s0 = inlined_call_operand.hbm [shape: f32[2,4,256], index: 0, kind: input, shape index: {}]   ;;  %s756_s1 = inlined_call_operand.vmem [shape: f32[1,4], index: 1, kind: input, shape index: {}]   ;;  %s757_s2 = inlined_call_operand.vmem [shape: f32[1,4], index: 2, kind: input, shape index: {}]   ;;  %s758_s3 = inlined_call_operand.hbm [shape: f32[2,4,256], index: 3, kind: output, shape index: {}]  }
   0x1   :  { %9 = vsyncpa [#allocation6], 0 }
   0x2   :  { %11 = vsyncpa [#allocation6 + $0x1], 0  ;;  %s665_s12 = smov 0   ;;  %s667_s13 = smov 0  }
   0x3   :  { %s669_s14 = smov 0  }
   0x4 LB: > { %s484_s15 = sadd.s32 4294967295, %s635_s14   ;;  %s485_s16 = sadd.s32 4294967294, %s635_s14   ;;  %s635_s14 = sphi %s669_s14, %s17_s14   ;;  %s631_s13 = sphi %s667_s13, %s763_s13   ;;  %s627_s12 = sphi %s665_s12, %s762_s12  }
   0x5   : > { %s29_s17 = sadd.s32 1, %s631_s13  ;;  %p486_p0 = scmp.ge.s32.totalorder %s635_s14, 1 }
   0x6   : > { %p31_p1 = scmp.ge.s32.totalorder %s29_s17, 2  ;;  %p130_p2 = scmp.lt.s32.totalorder %s635_s14, 3 }
   0x7   : > { %p687_p3 = scmp.eq.s32.totalorder %s484_s15, 0  ;;  %s637_s20 = smov [#allocation4]  }
   0x8   : > { %s765_s17 = smov (%p31_p1, %s29_s17), 0  ;;  %p693_p4 = pnand %p486_p0, %p130_p2 }
   0x9   : > { %s145_s21 = sshll.u32 %s637_s20, 4  ;;  %s146_s21 = int_to_ptr.vmem [resolvable:$true] %s145_s21 }
   0xa   : > { %p506_p5 = pneg %p693_p4  ;;  %s566_s22 = scalar_lea.vmem %s146_s21, 256 }
   0xb   : > { %p567_p8 = scmp.ne.s32.totalorder %s146_s21, %s566_s22  ;;  %p574_p11 = scmp.lt.s32.totalorder %s146_s21, %s146_s21 }
   0xc   : > { %p507_p6 = pnand %p687_p3, %p506_p5  ;;  %p575_p12 = scmp.lt.s32.totalorder %s566_s22, %s566_s22 }
   0xe   : > { %p557_p7 = pneg %p507_p6  ;;  %p576_p13 = por %p575_p12, %p574_p11 }
  0x10   : > { %p569_p9 = pnand %p567_p8, %p557_p7 }
  0x12   : > { %p570_p10 = pneg %p569_p9 }
  0x14   : > { %p577_p0 = pnand %p576_p13, %p570_p10 }
  0x16   : > { %580 = shalt.err (!%p577_p0)
}
  0x17   : > { %s638_s23 = smov 128   ;;  %s639_s24 = smov 8  }
  0x18   : > { %509 = dma.hbm_to_vmem [thread:$0]  (!%p507_p6), %s755_s0, 256, %s146_s21, [#allocation5], %s638_s23, %s638_s23, %s639_s24  }
  0x19   : > { %167 = sbr.rel (%p693_p4) target bundleno = 386 (0x182), region = 32 }
  0x1e   : > { %618 = dma.done.wait (%p687_p3), [#allocation5], 256  }
  0x1f   : > { %620 = vsyncadd (%p687_p3), [#allocation5], 4294967040  ;;  %p490_p1 = scmp.ne.s32.totalorder %s627_s12, 0 }
  0x21   : > { %192 = sbr.rel (%p490_p1) target bundleno = 194 (0xc2), region = 40 }
  0x26   : > { %v200_v0 = vld [vmem:[#allocation4] sm:$0xff]  ;;  %vm209_vm0 = vcmask 1043456   ;;  %v201_v1 = vld [vmem:[#allocation4 + $0x8] sm:$0xff]  ;;  %vm197_vm1 = vcmask 25600   ;;  %v640_v20 = vmov 0.0   ;;  %v222_v21 = vlaneseq }
  0x27   : > { %v205_v2 = vcombine.high %v200_v0, %v200_v0  ;;  %v210_v3 = vsel %vm209_vm0, %v200_v0, 0.0  ;;  %v239_v4 = vmul.f32 %v200_v0, %v200_v0  ;;  %v206_v5 = vcombine.high %v201_v1, %v201_v1  ;;  %198 = vst.msk [vmem:[#allocation2] sm:$0x3] %vm197_vm1, %v640_v20  ;;  %199 = vst.msk [vmem:[#allocation3] sm:$0x3] %vm197_vm1, %v640_v20 }
  0x28   : > { %v215_v6 = vsel %vm209_vm0, %v201_v1, 0.0  ;;  %v240_v7 = vmul.f32 %v201_v1, %v201_v1  ;;  %v223_v22 = vand.u32 127, %v222_v21  ;;  %v225_v23 = vshrl.u32 %v222_v21, 7 }
  0x29   : > { %v211_v8 = vsel %vm209_vm0, %v205_v2, 0.0  ;;  %v243_v9 = vcombine.high %v239_v4, %v239_v4  ;;  %v247_v10 = vsel %vm209_vm0, %v239_v4, 0.0  ;;  %v216_v11 = vsel %vm209_vm0, %v206_v5, 0.0 }
  0x2a   : > { %v212_v12 = vadd.f32 %v211_v8, %v210_v3  ;;  %v244_v13 = vcombine.high %v240_v7, %v240_v7  ;;  %v252_v15 = vsel %vm209_vm0, %v240_v7, 0.0  ;;  %v217_v17 = vadd.f32 %v216_v11, %v215_v6 }
  0x2b   : > { %v248_v14 = vsel %vm209_vm0, %v243_v9, 0.0  ;;  %v226_v25 = vsub.s32 %v223_v22, %v225_v23  ;;  %vm232_vm2 = vcmask 1041409  }
  0x2c   : > { %213 = vadd.xlane.f32.xlu0 %v212_v12  ;;  %v249_v16 = vadd.f32 %v248_v14, %v247_v10  ;;  %v253_v18 = vsel %vm209_vm0, %v244_v13, 0.0 }
  0x2d   : > { %v254_v19 = vadd.f32 %v253_v18, %v252_v15 }
  0x2e   : > { %250 = vadd.xlane.f32.xlu1 %v249_v16  ;;  %v202_v29 = vld [vmem:[#allocation2] sm:$0x3]  ;;  %v238_v34 = vld [vmem:[#allocation3] sm:$0x3] }
  0x30   : > { %218 = vadd.xlane.f32.xlu0 %v217_v17 }
  0x32   : > { %255 = vadd.xlane.f32.xlu1 %v254_v19 }
  0xb5   : > { %v214_v24 = vpop.xlane.xlu0 %213 }
  0xb6   : > { %v227_v28 = vrot.slane %v214_v24, %v226_v25 }
  0xb7   : > { %v251_v26 = vpop.xlane.xlu1 %250 }
  0xb8   : > { %v262_v32 = vrot.slane %v251_v26, %v226_v25 }
  0xb9   : > { %v219_v27 = vpop.xlane.xlu0 %218 }
  0xba   : > { %v231_v30 = vrot.slane %v219_v27, %v226_v25 }
  0xbb   : > { %v256_v31 = vpop.xlane.xlu1 %255 }
  0xbc   : > { %v233_v33 = vsel %vm232_vm2, %v231_v30, %v227_v28  ;;  %v266_v35 = vrot.slane %v256_v31, %v226_v25 }
  0xbd   : > { %v235_v36 = vadd.f32 %v233_v33, %v202_v29 }
  0xbe   : > { %v267_v37 = vsel %vm232_vm2, %v266_v35, %v262_v32 }
  0xbf   : > { %237 = vst.msk [vmem:[#allocation2] sm:$0x3] %vm197_vm1, %v235_v36  ;;  %v269_v38 = vadd.f32 %v267_v37, %v238_v34 }
  0xc1   : > { %270 = vst.msk [vmem:[#allocation3] sm:$0x3] %vm197_vm1, %v269_v38 }
  0xc2 PF: > { %p491_p2 = scmp.ne.s32.totalorder %s627_s12, 1 }
  0xc4   : > { %274 = sbr.rel (%p491_p2) target bundleno = 372 (0x174), region = 48 }
  0xc9   : > { %v275_v39 = vld [vmem:[#allocation2] sm:$0x3]  ;;  %v276_v40 = vld [vmem:[#allocation3] sm:$0x3]  ;;  %vm277_vm3 = vcmask 25600   ;;  %v300_v52 = vlaneseq  ;;  %v325_v22 = vld [vmem:[#allocation4] sm:$0xff] }
  0xca   : > { %v278_v41 = vsel %vm277_vm3, %v275_v39, 0.0  ;;  %v286_v42 = vsel %vm277_vm3, %v276_v40, 0.0  ;;  %v296_v51 = vmul.f32 0.00390625, %v275_v39  ;;  %v297_v57 = vmul.f32 0.00390625, %v276_v40  ;;  %v492_v5 = vld [vmem:[%s756_s1] ss:$0 sm:$0xff] }
  0xcb   : > { %v279_v43 = vrot.slane %v278_v41, 4  ;;  %v287_v44 = vrot.slane %v286_v42, 4  ;;  %v301_v59 = vand.u32 127, %v300_v52  ;;  %v328_v4 = vshrl.u32 %v300_v52, 7  ;;  %v493_v11 = vld [vmem:[%s757_s2] ss:$0 sm:$0xff] }
  0xcc   : > { %v298_v58 = vmul.f32 %v296_v51, %v296_v51  ;;  %v641_v18 = vmov 839922192   ;;  %v326_v27 = vld [vmem:[#allocation4 + $0x8] sm:$0xff] }
  0xcd   : > { %v280_v45 = vadd.f32 %v279_v43, %v278_v41  ;;  %v288_v46 = vadd.f32 %v287_v44, %v286_v42  ;;  %vm302_vm4 = vcmp.lt.s32.totalorder %v301_v59, 2  ;;  %v329_v6 = vsub.s32 0, %v328_v4 }
  0xce   : > { %v299_v63 = vsub.f32 %v297_v57, %v298_v58  ;;  %v336_v10 = vsub.s32 1, %v328_v4  ;;  %v344_v19 = vunpack.c.l.s4 %v641_v18 }
  0xcf   : > { %v281_v47 = vrot.slane %v280_v45, 2  ;;  %v289_v48 = vrot.slane %v288_v46, 2 }
  0xd0   : > { %v345_v20 = vunpack.c.0.s8 %v344_v19 }
  0xd1   : > { %v282_v49 = vadd.f32 %v281_v47, %v280_v45  ;;  %v290_v50 = vadd.f32 %v289_v48, %v288_v46 }
  0xd2   : > { %v348_v21 = vsub.s32 %v345_v20, %v328_v4 }
  0xd3   : > { %v283_v53 = vrot.slane %v282_v49, 1  ;;  %v291_v54 = vrot.slane %v290_v50, 1 }
  0xd5   : > { %v284_v55 = vadd.f32 %v283_v53, %v282_v49  ;;  %v292_v56 = vadd.f32 %v291_v54, %v290_v50 }
  0xd7   : > { %v285_v60 = vmul.f32 0.001953125, %v284_v55  ;;  %v293_v61 = vmul.f32 0.001953125, %v292_v56 }
  0xd9   : > { %v294_v62 = vmul.f32 %v285_v60, %v285_v60  ;;  %v303_v8 = vsel %vm302_vm4, %v285_v60, %v296_v51 }
  0xdb   : > { %v295_v0 = vsub.f32 %v293_v61, %v294_v62 }
  0xdd   : > { %v304_v1 = vsel %vm302_vm4, %v295_v0, %v299_v63 }
  0xde   : > { %v305_v2 = vmax.f32 %v304_v1, 0.0 }
  0xe0   : > { %v307_v3 = vadd.f32 1e-05, %v305_v2 }
  0xe2   : > { %553 = vrsqrt.f32 %v307_v3 }
  0xef   : > { %v554_v7 = vpop.eup %553 }
  0xf0   : > { %v315_v9 = vmul.f32 %v554_v7, %v492_v5 }
  0xf2   : > { %v330_v12 = vrot.slane %v315_v9, %v329_v6  ;;  %v317_v13 = vmul.f32 %v315_v9, %v303_v8  ;;  %v337_v15 = vrot.slane %v315_v9, %v336_v10 }
  0xf4   : > { %332 = vbcast.lane.b32.xlu0 %v330_v12, 256  ;;  %v324_v14 = vsub.f32 %v493_v11, %v317_v13 }
  0xf6   : > { %v364_v16 = vrot.slane %v324_v14, %v329_v6  ;;  %v371_v17 = vrot.slane %v324_v14, %v336_v10 }
  0xf8   : > { %366 = vbcast.lane.b32.xlu1 %v364_v16, 256  ;;  %339 = vbcast.lane.b32.xlu0 %v337_v15, 256 }
  0xfc   : > { %373 = vbcast.lane.b32.xlu1 %v371_v17, 256 }
 0x166   : > { %v333_v23 = vpop.permute.xlu0 %332 }
 0x167   : > { %v349_v24 = vrot.slane %v333_v23, %v348_v21 }
 0x169   : > { %v359_v25 = vmul.f32 %v349_v24, %v325_v22 }
 0x16a   : > { %v367_v26 = vpop.permute.xlu1 %366  ;;  %v340_v28 = vpop.permute.xlu0 %339 }
 0x16b   : > { %v383_v29 = vrot.slane %v367_v26, %v348_v21  ;;  %v356_v30 = vrot.slane %v340_v28, %v348_v21 }
 0x16d   : > { %v393_v31 = vadd.f32 %v383_v29, %v359_v25  ;;  %v360_v32 = vmul.f32 %v356_v30, %v326_v27 }
 0x16e   : > { %v374_v33 = vpop.permute.xlu1 %373 }
 0x16f   : > { %395 = vst [vmem:[#allocation7] sm:$0xff] %v393_v31  ;;  %v390_v34 = vrot.slane %v374_v33, %v348_v21 }
 0x171   : > { %v394_v35 = vadd.f32 %v390_v34, %v360_v32 }
 0x173   : > { %396 = vst [vmem:[#allocation7 + $0x8] sm:$0xff] %v394_v35 }
 0x174 PF: > { %p732_p3 = scmp.eq.s32.totalorder %s484_s15, 1  ;;  %s642_s5 = smov [#allocation7]  }
 0x175   : > { %s412_s6 = sshll.u32 %s642_s5, 4  ;;  %s413_s6 = int_to_ptr.vmem [resolvable:$true] %s412_s6 }
 0x176   : > { %s581_s7 = scalar_lea.vmem %s413_s6, 256  ;;  %s587_s8 = scalar_lea.vmem %s413_s6, 512 }
 0x177   : > { %p582_p4 = scmp.ne.s32.totalorder %s413_s6, %s581_s7  ;;  %p588_p7 = scmp.lt.s32.totalorder %s413_s6, %s413_s6 }
 0x178   : > { %p589_p8 = scmp.lt.s32.totalorder %s587_s8, %s581_s7 }
 0x179   : > { %p583_p5 = pnand %p582_p4, %p732_p3 }
 0x17a   : > { %p590_p9 = por %p589_p8, %p588_p7 }
 0x17b   : > { %p584_p6 = pneg %p583_p5 }
 0x17d   : > { %p591_p10 = pnand %p590_p9, %p584_p6 }
 0x17f   : > { %594 = shalt.err (!%p591_p10)
}
 0x180   : > { %s643_s9 = smov 128   ;;  %s644_s10 = smov 8  }
 0x181   : > { %503 = dma.vmem_to_hbm [thread:$0]  (%p732_p3), %s413_s6, 256, %s758_s3, [#allocation6], %s643_s9, %s643_s9, %s644_s10  }
 0x182 PF: > { %p517_p11 = scmp.ge.s32.totalorder %s635_s14, 2  ;;  %p518_p12 = scmp.eq.s32.totalorder %s485_s16, 1 }
 0x184   : > { %p511_p13 = pnand %p518_p12, %p517_p11 }
 0x186   : > { %p512_p0 = pneg %p511_p13 }
 0x188   : > { %622 = dma.done.wait (%p512_p0), [#allocation6], 256  }
 0x189   : > { %624 = vsyncadd (%p512_p0), [#allocation6], 4294967040  ;;  %s17_s14 = sadd.s32 1, %s635_s14   ;;  %s762_s12 = smov %s631_s13 }
 0x18a   : > { %p14_p1 = scmp.ge.s32.totalorder %s17_s14, 4   ;;  %s763_s13 = smov %s765_s17 }
 0x18c   :  { %16 = sbr.rel (!%p14_p1) target bundleno = 4 (0x4), region = 82 }
 0x191   :  { %433 = vsyncpa [#allocation5], 1 }
 0x192   :  { %435 = vsyncpa [#allocation5 + $0x1], 1 }
 0x193   :  { %436 = vsyncpa [#allocation6], 1 }
 0x194   :  { %438 = vsyncpa [#allocation6 + $0x1], 1 }

</bundles_post_ra>
